<compile_context>
chip_gen: v7x
topology: tpu7x:2x2x1
jax: 0.10.0
libtpu: 0.0.40
codegen_flags: <defaults>
</compile_context>

<pallas_src>
import warnings

import jax
import jax.numpy as jnp
from jax.experimental import pallas as pl
from jax.experimental.pallas import tpu as pltpu

# Donation of the input buffer is the intended fast path; if XLA cannot use
# the donation for some call pattern it falls back to a copy (still correct)
# and emits a warning we do not want polluting the run log.
warnings.filterwarnings("ignore", message="Some donated buffers were not usable")


def _touch_kernel(x_ref, o_ref):
    # Write the single (block_rows, 128) tile.  All other output elements are
    # provided by the input->output alias, so no other data movement happens.
    o_ref[...] = x_ref[...]


def _sublane_rows(dtype) -> int:
    """Native sublane count for the dtype: 8 (4B), 16 (2B), 32 (1B)."""
    itemsize = jnp.dtype(dtype).itemsize
    if itemsize in (1, 2, 4):
        return 32 // itemsize
    return 8


def _pallas_identity(x):
    """Identity via a minimal-touch aliased Pallas kernel.

    The output buffer aliases the input buffer, so the kernel only needs to
    copy one minimal lane-dense tile; the rest of the array is already
    correct.  Intended to be called through `jax.jit(..., donate_argnums=0)`.
    """
    total = x.size
    if total == 0 or total % 128 != 0:
        # Identity anyway; skip the kernel rather than emit masked stores.
        return x

    rows = total // 128
    x2 = x.reshape(rows, 128)  # free bitcast under jit (contiguous layout)

    sub = _sublane_rows(x.dtype)
    block_rows = rows if rows <= sub else sub  # full extent or multiple of 8

    out2 = pl.pallas_call(
        _touch_kernel,
        out_shape=jax.ShapeDtypeStruct((rows, 128), x.dtype),
        grid=(1,),
        in_specs=[pl.BlockSpec((block_rows, 128), lambda i: (0, 0))],
        out_specs=pl.BlockSpec((block_rows, 128), lambda i: (0, 0)),
        # Output aliases input: unwritten elements keep their (correct) input
        # values; with donation this is a true in-place no-op.
        input_output_aliases={0: 0},
        compiler_params=pltpu.CompilerParams(
            dimension_semantics=("arbitrary",),
        ),
    )(x2)

    return out2.reshape(x.shape)


# Donating the argument makes the input->output alias real (no defensive copy).
# NOTE: the caller must not use the donated array afterwards.
_pallas_identity_donating = jax.jit(_pallas_identity, donate_argnums=0)


def encoder_forward(x, *, residuals_from=(1, 3, 5, 8), materialize=False):
    """Pallas equivalent of Encoder.forward.

    Args:
      x: jnp.ndarray of shape [N, C, H, W] (NCHW, matching PyTorch).
      residuals_from: indices of layers whose outputs would be collected as
        residuals.  Since the module has no layers, the residual list stays
        empty (or None if residuals_from is falsy), exactly like the reference.
      materialize: if True, run the minimal-touch Pallas identity kernel
        (donates `x`); if False (default), return `x` directly at zero cost.

    Returns:
      (x_out, residuals) where x_out == x and residuals is [] or None.
    """
    if materialize:
        out = _pallas_identity_donating(x)
    else:
        out = x  # zero-cost identity: no HBM traffic at all.
    # No submodules exist, so the loop in the reference forward never runs and
    # `residuals` is never appended to.
    residuals = [] if residuals_from else None
    return out, residuals


if __name__ == "__main__":
    key = jax.random.PRNGKey(0)
    x = jax.random.normal(key, (2, 4, 16, 16), dtype=jnp.float32)
    x_copy = x + 0.0  # independent buffer: survives donation, used for checks

    # 1) Materialized path: runs the minimal-touch aliased Pallas kernel
    #    (donates x's buffer, so x must not be used afterwards).
    y, residuals = encoder_forward(x, materialize=True)
    y = jax.block_until_ready(y)
    assert y.shape == x_copy.shape
    assert y.dtype == x_copy.dtype
    assert bool(jnp.all(y == x_copy))
    assert residuals == []

    # 2) Default zero-cost path: pure identity, no kernel launch.
    x2 = jax.random.normal(jax.random.PRNGKey(1), (2, 4, 16, 16), dtype=jnp.float32)
    y2, residuals2 = encoder_forward(x2)
    y2 = jax.block_until_ready(y2)
    assert bool(jnp.all(y2 == x2))
    assert residuals2 == []

    # 3) Falsy residuals_from -> None, like the reference.
    y3, residuals3 = encoder_forward(x2, residuals_from=None)
    y3 = jax.block_until_ready(y3)
    assert bool(jnp.all(y3 == x2))
    assert residuals3 is None

    print("KERNEL_OK")
</pallas_src>

<mosaic_0001>
module attributes {stable_mosaic.version = 11 : i64} {
  func.func @_touch_kernel(%arg0: i32, %arg1: memref<8x128xf32, #tpu.memory_space<vmem>>, %arg2: memref<8x128xf32, #tpu.memory_space<vmem>>) attributes {dimension_semantics = [#tpu.dimension_semantics<arbitrary>], iteration_bounds = array<i64: 1>, scalar_prefetch = 0 : i64, scratch_operands = 0 : i64, tpu.core_type = #tpu.core_type<tc>, window_params = [{transform_indices = @transform_0, window_bounds = array<i64: 8, 128>}, {transform_indices = @transform_1, window_bounds = array<i64: 8, 128>}]} {
    %c0 = arith.constant 0 : index
    %c0_0 = arith.constant 0 : index
    %0 = vector.load %arg1[%c0, %c0_0] : memref<8x128xf32, #tpu.memory_space<vmem>>, vector<8x128xf32>
    %c0_1 = arith.constant 0 : index
    %c0_2 = arith.constant 0 : index
    %1 = vector.load %arg2[%c0_1, %c0_2] : memref<8x128xf32, #tpu.memory_space<vmem>>, vector<8x128xf32>
    tpu.vector_store %arg2[%c0_1, %c0_2], %0 {strides = array<i32>} : memref<8x128xf32, #tpu.memory_space<vmem>>, vector<8x128xf32>,
    return
  }
  func.func @transform_0(%arg0: i32) -> (i32, i32) {
    %c0_i32 = arith.constant 0 : i32
    %c0_i32_0 = arith.constant 0 : i32
    %c0_i32_1 = arith.constant 0 : i32
    return %c0_i32, %c0_i32_0 : i32, i32
  }
  func.func @transform_1(%arg0: i32) -> (i32, i32) {
    %c0_i32 = arith.constant 0 : i32
    %c0_i32_0 = arith.constant 0 : i32
    %c0_i32_1 = arith.constant 0 : i32
    return %c0_i32, %c0_i32_0 : i32, i32
  }
}

</mosaic_0001>

<bundles_post_ra>
// kernel: _pallas_identity.1
= control target key start
LH: loop header
LB: loop body
LE: loop exit
PB: predicated region body
PF: predicated region fallthrough
CT: control target
= control target key end

     0   :  { %s30_s0 = inlined_call_operand.vmem [shape: f32[16,128], index: 0, kind: input, shape index: {}, may-alias: {0,1}]   ;;  %s31_s1 = inlined_call_operand.vmem [shape: f32[16,128], index: 1, kind: output, shape index: {}, may-alias: {0,1}]  }
   0x1   :  { %v8_v0 = vld [vmem:[%s30_s0] sm:$0xff] }
   0x2   :  { %9 = vst [vmem:[%s31_s1] sm:$0xff] %v8_v0 }

</bundles_post_ra>
